<compile_context>
chip_gen: v6e
topology: v6e:2x2x1
jax: 0.10.0
libtpu: 0.0.40
codegen_flags: <defaults>
</compile_context>

<pallas_src>
import jax
import jax.numpy as jnp
from jax.experimental import pallas as pl
from jax.experimental.pallas import tpu as pltpu


def weighted_sum_kernel(x_ref, w_ref, o_ref):
    # x_ref: (tile_b, S, tile_d) VMEM;  w_ref: (1, S, 1) VMEM;  o_ref: (tile_b, tile_d)
    x = x_ref[...].astype(jnp.float32)
    w = w_ref[...].astype(jnp.float32)
    o_ref[...] = jnp.sum(x * w, axis=1).astype(o_ref.dtype)


def _pick_tile_d(D):
    # Lane-dense tile: full D (always a legal block) for small/unaligned D,
    # otherwise 512 lanes (multiple of 128); edge blocks are masked via cdiv grid.
    if D <= 512:
        return D
    return 512


def _pick_tile_b(B, D, S, tile_d, dtype, target_bytes=4 << 20):
    # Size the batch tile by *physical* VMEM bytes, including sublane padding
    # of the S axis (8 for f32, 16 for bf16, 32 for int8).
    itemsize = jnp.dtype(dtype).itemsize
    pack = max(8, 32 // itemsize)
    s_pad = ((S + pack - 1) // pack) * pack
    row_bytes = s_pad * tile_d * itemsize          # physical bytes per batch row
    tb = int(max(1, target_bytes // row_bytes))
    if tb >= B:
        tile_b = B                                 # full dim: legal for any B
    else:
        tile_b = max(8, (tb // 8) * 8)             # multiple of 8 (output sublane rule)
    # Megacore guard (v7x has 2 TCs): keep a few grid steps so both cores work.
    while tile_b > 8 and pl.cdiv(B, tile_b) * pl.cdiv(D, tile_d) < 4:
        tile_b = max(8, ((tile_b // 2) // 8) * 8)
    return tile_b


def weighted_summation(subtypes, weights, *, tile_b=None, tile_d=None):
    """subtypes: (B, S, D); weights: (S, 1) -> (B, D) (weighted sum over S)."""
    B, S, D = subtypes.shape
    itemsize = jnp.dtype(subtypes.dtype).itemsize

    if tile_d is None:
        tile_d = _pick_tile_d(D)
    if tile_b is None:
        tile_b = _pick_tile_b(B, D, S, tile_d, subtypes.dtype)

    grid = (pl.cdiv(B, tile_b), pl.cdiv(D, tile_d))
    w_block = weights.reshape(1, S, 1).astype(jnp.float32)

    cost = pl.CostEstimate(
        flops=2 * B * S * D,
        transcendentals=0,
        bytes_accessed=B * S * D * itemsize + B * D * itemsize + S * 4,
    )

    return pl.pallas_call(
        weighted_sum_kernel,
        out_shape=jax.ShapeDtypeStruct((B, D), subtypes.dtype),
        grid_spec=pltpu.PrefetchScalarGridSpec(
            num_scalar_prefetch=0,
            grid=grid,
            in_specs=[
                pl.BlockSpec((tile_b, S, tile_d), lambda b, d: (b, 0, d)),
                pl.BlockSpec((1, S, 1), lambda b, d: (0, 0, 0)),
            ],
            out_specs=pl.BlockSpec((tile_b, tile_d), lambda b, d: (b, d)),
        ),
        compiler_params=pltpu.CompilerParams(
            dimension_semantics=("parallel", "parallel"),
            vmem_limit_bytes=32 * 1024 * 1024,
        ),
        cost_estimate=cost,
    )(subtypes, w_block)


if __name__ == "__main__":
    key = jax.random.PRNGKey(0)

    B, S, D = 2, 4, 32  # batch, num_subtypes, feature dim (small test shape)
    subtypes = jax.random.normal(key, (B, S, D), dtype=jnp.float32)

    # Parameter from the module's __init__: torch.ones(num_subtypes, 1)
    weights = jnp.ones((S, 1), dtype=jnp.float32)

    out = weighted_summation(subtypes, weights)
    out = jax.block_until_ready(out)

    # reference check (plain JAX)
    ref = jnp.sum(subtypes * weights[None, :, :], axis=1)
    assert out.shape == (B, D)
    assert jnp.allclose(out, ref, atol=1e-5, rtol=1e-5)

    print("KERNEL_OK")
</pallas_src>

<mosaic_0001>
module attributes {stable_mosaic.version = 11 : i64} {
  func.func @weighted_sum_kernel(%arg0: i32, %arg1: i32, %arg2: memref<2x4x32xf32, #tpu.memory_space<vmem>>, %arg3: memref<1x4x1xf32, #tpu.memory_space<vmem>>, %arg4: memref<2x32xf32, #tpu.memory_space<vmem>>) attributes {dimension_semantics = [#tpu.dimension_semantics<parallel>, #tpu.dimension_semantics<parallel>], iteration_bounds = array<i64: 1, 1>, scalar_prefetch = 0 : i64, scratch_operands = 0 : i64, tpu.core_type = #tpu.core_type<tc>, window_params = [{transform_indices = @transform_0, window_bounds = array<i64: 2, 4, 32>}, {pipeline_mode = #tpu.pipeline_mode<synchronous>, transform_indices = @transform_1, window_bounds = array<i64: 1, 4, 1>}, {transform_indices = @transform_2, window_bounds = array<i64: 2, 32>}]} {
    %c0 = arith.constant 0 : index
    %c0_0 = arith.constant 0 : index
    %c0_1 = arith.constant 0 : index
    %0 = vector.load %arg2[%c0, %c0_0, %c0_1] : memref<2x4x32xf32, #tpu.memory_space<vmem>>, vector<2x4x32xf32>
    %c0_2 = arith.constant 0 : index
    %c0_3 = arith.constant 0 : index
    %c0_4 = arith.constant 0 : index
    %1 = vector.load %arg3[%c0_2, %c0_3, %c0_4] : memref<1x4x1xf32, #tpu.memory_space<vmem>>, vector<1x4x1xf32>
    %2 = vector.broadcast %1 : vector<1x4x1xf32> to vector<2x4x32xf32>
    %3 = arith.mulf %0, %2 : vector<2x4x32xf32>
    %cst = arith.constant dense<0.000000e+00> : vector<2x32xf32>
    %4 = vector.multi_reduction <add>, %3, %cst [1] : vector<2x4x32xf32> to vector<2x32xf32>
    %c0_5 = arith.constant 0 : index
    %c0_6 = arith.constant 0 : index
    %5 = vector.load %arg4[%c0_5, %c0_6] : memref<2x32xf32, #tpu.memory_space<vmem>>, vector<2x32xf32>
    tpu.vector_store %arg4[%c0_5, %c0_6], %4 {strides = array<i32>} : memref<2x32xf32, #tpu.memory_space<vmem>>, vector<2x32xf32>,
    return
  }
  func.func @transform_0(%arg0: i32, %arg1: i32) -> (i32, i32, i32) {
    %c0_i32 = arith.constant 0 : i32
    %c0_i32_0 = arith.constant 0 : i32
    return %arg0, %c0_i32, %arg1 : i32, i32, i32
  }
  func.func @transform_1(%arg0: i32, %arg1: i32) -> (i32, i32, i32) {
    %c0_i32 = arith.constant 0 : i32
    %c0_i32_0 = arith.constant 0 : i32
    %c0_i32_1 = arith.constant 0 : i32
    %c0_i32_2 = arith.constant 0 : i32
    return %c0_i32, %c0_i32_0, %c0_i32_1 : i32, i32, i32
  }
  func.func @transform_2(%arg0: i32, %arg1: i32) -> (i32, i32) {
    %c0_i32 = arith.constant 0 : i32
    return %arg0, %arg1 : i32, i32
  }
}

</mosaic_0001>

<bundles_post_ra>
// kernel: tpu_custom_call.1
= control target key start
LH: loop header
LB: loop body
LE: loop exit
PB: predicated region body
PF: predicated region fallthrough
CT: control target
= control target key end

     0   :  { %7 = vsyncpa [#allocation3], 0  ;;  %s152_s0 = inlined_call_operand.hbm [shape: f32[2,4,32], index: 0, kind: input, shape index: {}]   ;;  %s153_s1 = inlined_call_operand.vmem [shape: f32[1,4,1], index: 1, kind: input, shape index: {}]   ;;  %s154_s2 = inlined_call_operand.hbm [shape: f32[2,32], index: 2, kind: output, shape index: {}]  }
   0x1   :  { %8 = vsyncpa [#allocation4], 0  ;;  %s123_s9 = smov [#allocation2]  }
   0x2   :  { %s14_s10 = sshll.u32 %s123_s9, 4  ;;  %s15_s10 = int_to_ptr.vmem [resolvable:$true] %s14_s10 }
   0x3   :  { %s87_s11 = scalar_lea.vmem %s15_s10, 128  ;;  %p92_p1 = scmp.lt.s32.totalorder %s15_s10, %s15_s10 }
   0x4   :  { %p88_p0 = scmp.ne.s32.totalorder %s15_s10, %s87_s11  ;;  %p93_p2 = scmp.lt.s32.totalorder %s87_s11, %s87_s11 }
   0x6   :  { %p94_p3 = por %p93_p2, %p92_p1 }
   0x8   :  { %p95_p4 = pnand %p94_p3, %p88_p0 }
   0xa   :  { %98 = shalt.err (!%p95_p4)
}
   0xb   :  { %s124_s12 = smov 64   ;;  %s125_s13 = smov 4  }
   0xc   :  { %20 = dma.hbm_to_vmem [thread:$0]  %s152_s0, 128, %s15_s10, [#allocation3], %s124_s12, %s124_s12, %s125_s13  }
   0xd   :  { %119 = dma.done.wait [#allocation3], 128  }
   0xe   :  { %120 = vsyncadd [#allocation3], 4294967168  ;;  %v126_v0 = vmov 0   ;;  %v28_v1 = vld [vmem:[%s153_s1] sm:$0xf]  ;;  %vm36_vm0 = vcmask 257024  }
   0xf   :  { %78 = vset.pattern.permute.xlu0 %v126_v0  ;;  %v26_v2 = vld [vmem:[#allocation2] sm:$0xf]  ;;  %v27_v3 = vld [vmem:[#allocation2 + $0x4] sm:$0xf]  ;;  %s127_s0 = smov [#allocation5]   ;;  %vm53_vm1 = vcmask 1041409  }
  0x10   :  { %31 = vperm.xlu0 %78, %v28_v1   ;;  %s64_s1 = sshll.u32 %s127_s0, 4  ;;  %vm56_vm2 = vcmask 254976   ;;  %s65_s1 = int_to_ptr.vmem [resolvable:$true] %s64_s1 }
  0x11   :  { %s99_s18 = scalar_lea.vmem %s65_s1, 32  ;;  %p104_p6 = scmp.lt.s32.totalorder %s65_s1, %s65_s1 }
  0x12   :  { %p100_p5 = scmp.ne.s32.totalorder %s65_s1, %s99_s18  ;;  %p105_p7 = scmp.lt.s32.totalorder %s99_s18, %s99_s18 }
  0x14   :  { %p106_p8 = por %p105_p7, %p104_p6 }
  0x16   :  { %p107_p9 = pnand %p106_p8, %p100_p5 }
  0x8b   :  { %v32_v4 = vpop.permute.xlu0 %31 }
  0x8c   :  { %v34_v5 = vmul.f32 %v32_v4, %v26_v2  ;;  %v35_v6 = vmul.f32 %v32_v4, %v27_v3 }
  0x8e   :  { %v37_v7 = vsel %vm36_vm0, %v34_v5, 0.0  ;;  %v44_v8 = vsel %vm36_vm0, %v35_v6, 0.0 }
  0x8f   :  { %v38_v9 = vrot.slane %v37_v7, 4  ;;  %v45_v10 = vrot.slane %v44_v8, 4 }
  0x91   :  { %v39_v11 = vadd.f32 %v38_v9, %v37_v7  ;;  %v46_v12 = vadd.f32 %v45_v10, %v44_v8 }
  0x93   :  { %v40_v13 = vrot.slane %v39_v11, 2  ;;  %v47_v14 = vrot.slane %v46_v12, 2 }
  0x95   :  { %v41_v15 = vadd.f32 %v40_v13, %v39_v11  ;;  %v48_v16 = vadd.f32 %v47_v14, %v46_v12 }
  0x97   :  { %v42_v17 = vrot.slane %v41_v15, 1  ;;  %v49_v18 = vrot.slane %v48_v16, 1 }
  0x99   :  { %v43_v19 = vadd.f32 %v42_v17, %v41_v15  ;;  %v50_v20 = vadd.f32 %v49_v18, %v48_v16 }
  0x9b   :  { %v54_v21 = vsel %vm53_vm1, %v50_v20, %v43_v19 }
  0x9c   :  { %57 = vst.msk [vmem:[#allocation5] sm:$0x3] %vm56_vm2, %v54_v21 }
  0x9d   :  { %110 = shalt.err (!%p107_p9)
}
  0x9e   :  { %67 = dma.vmem_to_hbm [thread:$0]  %s65_s1, 32, %s154_s2, [#allocation4]  }
  0x9f   :  { %121 = dma.done.wait [#allocation4], 32  }
  0xa0   :  { %122 = vsyncadd [#allocation4], 4294967264 }
  0xa1   :  { %71 = vsyncpa [#allocation3], 1 }
  0xa2   :  { %72 = vsyncpa [#allocation4], 1 }

</bundles_post_ra>
